<compile_context>
chip_gen: v5e
topology: v5e:2x2
jax: 0.10.0
libtpu: 0.0.40
codegen_flags: <defaults>
</compile_context>

<pallas_src>
import jax
import jax.numpy as jnp
from jax.experimental import pallas as pl
from jax.experimental.pallas import tpu as pltpu


def _round_up(x, m):
    return ((x + m - 1) // m) * m


def _multitask_kernel(u_ref, it_ref, usum_ref, w1_ref, b1_ref, w2_ref, b2_ref,
                      out_ref):
    u = u_ref[...]           # (TB, D) f32  user embeddings (batch tile)
    it = it_ref[...]         # (TB, D) f32  item embeddings (batch tile)
    usum = usum_ref[...]     # (1, D)  f32  GLOBAL sum_j user_emb[j]
    D = u.shape[1]

    # predictions[i] = it[i] . sum_j u[j]   ==  (it @ u.T).sum(axis=1)
    # VPU multiply + lane (XLU) reduce — no MXU, no transpose, no (B,B) buffer.
    pred = jnp.sum(it * usum, axis=1, keepdims=True)                 # (TB, 1)

    # First Linear(96,64) split over the three concat panels: same FLOPs,
    # no materialized (TB, 96) lane-padded concat buffer.
    h = jnp.dot(u, w1_ref[0:D, :], preferred_element_type=jnp.float32)
    h = h + jnp.dot(it, w1_ref[D:2 * D, :], preferred_element_type=jnp.float32)
    h = h + jnp.dot(u * it, w1_ref[2 * D:3 * D, :],
                    preferred_element_type=jnp.float32)
    h = jnp.maximum(h + b1_ref[...], 0.0)                            # (TB, 64)

    # Linear(64,1) as VPU multiply + lane reduce (avoid an N=1 MXU matmul);
    # scalar bias read from SMEM.
    score = jnp.sum(h * w2_ref[...], axis=1, keepdims=True) + b2_ref[0]  # (TB, 1)

    # Single combined output block per tile -> one write-back DMA.
    out_ref[:, 0:1] = pred
    out_ref[:, 1:2] = score


def multitask_forward(user_ids, item_ids, params, *, block_b=512):
    """Embedding gathers + global column sum in plain JAX; tiled hot path in Pallas."""
    u_emb = jnp.take(params["user_embedding"], user_ids, axis=0)      # (B, D)
    i_emb = jnp.take(params["item_embedding"], item_ids, axis=0)      # (B, D)
    w1, b1 = params["w1"], params["b1"]                               # (96,64), (1,64)
    w2, b2 = params["w2"], params["b2"]                               # (1,64), (1,)

    B, D = u_emb.shape
    H = w1.shape[1]

    # GLOBAL column sum over the full batch — must be computed before tiling.
    u_sum = jnp.sum(u_emb, axis=0, keepdims=True)                     # (1, D)

    # Batch tiling: TB multiple of 8, pad B up so the grid divides evenly.
    tb = min(block_b, _round_up(B, 8))
    b_pad = _round_up(B, tb)
    if b_pad != B:
        u_emb = jnp.pad(u_emb, ((0, b_pad - B), (0, 0)))
        i_emb = jnp.pad(i_emb, ((0, b_pad - B), (0, 0)))

    out = pl.pallas_call(
        _multitask_kernel,
        out_shape=jax.ShapeDtypeStruct((b_pad, 2), jnp.float32),
        grid=(b_pad // tb,),
        in_specs=[
            pl.BlockSpec((tb, D), lambda i: (i, 0)),        # user emb tile
            pl.BlockSpec((tb, D), lambda i: (i, 0)),        # item emb tile
            pl.BlockSpec((1, D), lambda i: (0, 0)),         # global colsum (resident)
            pl.BlockSpec((3 * D, H), lambda i: (0, 0)),     # w1 (resident)
            pl.BlockSpec((1, H), lambda i: (0, 0)),         # b1 (resident)
            pl.BlockSpec((1, H), lambda i: (0, 0)),         # w2 row (resident)
            pl.BlockSpec(memory_space=pltpu.MemorySpace.SMEM),  # b2 scalar
        ],
        out_specs=pl.BlockSpec((tb, 2), lambda i: (i, 0)),
        compiler_params=pltpu.CompilerParams(
            dimension_semantics=("parallel",)),               # v7x: 2 TCs split the grid
    )(u_emb, i_emb, u_sum, w1, b1, w2, b2)

    # squeeze() in torch: (B, 1) -> (B,)
    return out[:B, 0], out[:B, 1]


def init_params(key, num_users, num_items, embedding_dim=32):
    """Deterministic synthetic init mirroring the module's __init__ shapes."""
    k1, k2, k3, k4, k5, k6 = jax.random.split(key, 6)
    D = embedding_dim
    # ScaledEmbedding: normal(0, 1/embedding_dim)
    user_embedding = jax.random.normal(k1, (num_users, D), jnp.float32) / D
    item_embedding = jax.random.normal(k2, (num_items, D), jnp.float32) / D
    # nn.Linear(96,64) / nn.Linear(64,1): uniform(-1/sqrt(in), 1/sqrt(in)).
    # w1 stored pre-transposed as (in, out); w2 stored as a (1, 64) row.
    lim1 = 1.0 / jnp.sqrt(3.0 * D)
    lim2 = 1.0 / jnp.sqrt(64.0)
    w1 = jax.random.uniform(k3, (3 * D, 64), jnp.float32, -lim1, lim1)
    b1 = jax.random.uniform(k4, (1, 64), jnp.float32, -lim1, lim1)
    w2 = jax.random.uniform(k5, (1, 64), jnp.float32, -lim2, lim2)
    b2 = jax.random.uniform(k6, (1,), jnp.float32, -lim2, lim2)
    # Note: user/item bias embeddings exist in the module but the forward pass
    # never actually adds them (dead expression), so they are omitted here.
    return dict(user_embedding=user_embedding, item_embedding=item_embedding,
                w1=w1, b1=b1, w2=w2, b2=b2)


def _reference(user_ids, item_ids, params):
    """Literal translation of the original forward (validates the colsum rewrite)."""
    u = jnp.take(params["user_embedding"], user_ids, axis=0)
    it = jnp.take(params["item_embedding"], item_ids, axis=0)
    pred = jnp.sum(jnp.dot(it, u.T, precision="highest"), axis=1)
    feat = jnp.concatenate([u, it, u * it], axis=1)
    h = jnp.maximum(jnp.dot(feat, params["w1"], precision="highest")
                    + params["b1"], 0.0)
    score = (jnp.dot(h, params["w2"].T, precision="highest") + params["b2"])[:, 0]
    return pred, score


if __name__ == "__main__":
    key = jax.random.PRNGKey(0)
    pkey, ukey, ikey, ukey2, ikey2 = jax.random.split(key, 5)

    num_users, num_items, embedding_dim = 16, 24, 32
    params = init_params(pkey, num_users, num_items, embedding_dim)

    # --- small case: single tile ---
    batch = 8
    user_ids = jax.random.randint(ukey, (batch,), 0, num_users, dtype=jnp.int32)
    item_ids = jax.random.randint(ikey, (batch,), 0, num_items, dtype=jnp.int32)

    pred, score = multitask_forward(user_ids, item_ids, params)
    jax.block_until_ready((pred, score))

    ref_pred, ref_score = _reference(user_ids, item_ids, params)
    assert pred.shape == (batch,) and score.shape == (batch,)
    assert jnp.allclose(pred, ref_pred, atol=1e-4, rtol=1e-4)
    assert jnp.allclose(score, ref_score, atol=1e-4, rtol=1e-4)

    # --- larger case: exercises batch tiling (grid=(3,)) and batch padding ---
    batch2 = 300
    user_ids2 = jax.random.randint(ukey2, (batch2,), 0, num_users, dtype=jnp.int32)
    item_ids2 = jax.random.randint(ikey2, (batch2,), 0, num_items, dtype=jnp.int32)

    pred2, score2 = multitask_forward(user_ids2, item_ids2, params, block_b=128)
    jax.block_until_ready((pred2, score2))

    ref_pred2, ref_score2 = _reference(user_ids2, item_ids2, params)
    assert pred2.shape == (batch2,) and score2.shape == (batch2,)
    assert jnp.allclose(pred2, ref_pred2, atol=1e-3, rtol=1e-3)
    assert jnp.allclose(score2, ref_score2, atol=1e-3, rtol=1e-3)

    print("KERNEL_OK")
</pallas_src>

<mosaic_0001>
module attributes {stable_mosaic.version = 11 : i64} {
  func.func @_multitask_kernel(%arg0: i32, %arg1: memref<8x32xf32, #tpu.memory_space<vmem>>, %arg2: memref<8x32xf32, #tpu.memory_space<vmem>>, %arg3: memref<1x32xf32, #tpu.memory_space<vmem>>, %arg4: memref<96x64xf32, #tpu.memory_space<vmem>>, %arg5: memref<1x64xf32, #tpu.memory_space<vmem>>, %arg6: memref<1x64xf32, #tpu.memory_space<vmem>>, %arg7: memref<1xf32, #tpu.memory_space<smem>>, %arg8: memref<8x2xf32, #tpu.memory_space<vmem>>) attributes {dimension_semantics = [#tpu.dimension_semantics<parallel>], iteration_bounds = array<i64: 1>, scalar_prefetch = 0 : i64, scratch_operands = 0 : i64, tpu.core_type = #tpu.core_type<tc>, window_params = [{transform_indices = @transform_0, window_bounds = array<i64: 8, 32>}, {transform_indices = @transform_1, window_bounds = array<i64: 8, 32>}, {pipeline_mode = #tpu.pipeline_mode<synchronous>, transform_indices = @transform_2, window_bounds = array<i64: 1, 32>}, {pipeline_mode = #tpu.pipeline_mode<synchronous>, transform_indices = @transform_3, window_bounds = array<i64: 96, 64>}, {pipeline_mode = #tpu.pipeline_mode<synchronous>, transform_indices = @transform_4, window_bounds = array<i64: 1, 64>}, {pipeline_mode = #tpu.pipeline_mode<synchronous>, transform_indices = @transform_5, window_bounds = array<i64: 1, 64>}, {transform_indices = @transform_6, window_bounds = array<i64: 1>}, {transform_indices = @transform_7, window_bounds = array<i64: 8, 2>}]} {
    %c0 = arith.constant 0 : index
    %c0_0 = arith.constant 0 : index
    %0 = vector.load %arg1[%c0, %c0_0] : memref<8x32xf32, #tpu.memory_space<vmem>>, vector<8x32xf32>
    %c0_1 = arith.constant 0 : index
    %c0_2 = arith.constant 0 : index
    %1 = vector.load %arg2[%c0_1, %c0_2] : memref<8x32xf32, #tpu.memory_space<vmem>>, vector<8x32xf32>
    %c0_3 = arith.constant 0 : index
    %c0_4 = arith.constant 0 : index
    %2 = vector.load %arg3[%c0_3, %c0_4] : memref<1x32xf32, #tpu.memory_space<vmem>>, vector<1x32xf32>
    %3 = vector.broadcast %2 : vector<1x32xf32> to vector<8x32xf32>
    %4 = arith.mulf %1, %3 : vector<8x32xf32>
    %cst = arith.constant dense<0.000000e+00> : vector<8xf32>
    %5 = vector.multi_reduction <add>, %4, %cst [1] : vector<8x32xf32> to vector<8xf32>
    %6 = vector.shape_cast %5 : vector<8xf32> to vector<8x1xf32>
    %c0_5 = arith.constant 0 : index
    %c0_6 = arith.constant 0 : index
    %7 = vector.load %arg4[%c0_5, %c0_6] : memref<96x64xf32, #tpu.memory_space<vmem>>, vector<32x64xf32>
    %cst_7 = arith.constant dense<0.000000e+00> : vector<8x64xf32>
    %8 = tpu.matmul %0, %7, %cst_7 {dimension_numbers = #tpu.dot_dimension_numbers<[1], [0], [0], [1], [0, 0, 1, 1], [], []>} : vector<8x32xf32>, vector<32x64xf32>, vector<8x64xf32> -> vector<8x64xf32>
    %c32 = arith.constant 32 : index
    %c0_8 = arith.constant 0 : index
    %9 = vector.load %arg4[%c32, %c0_8] : memref<96x64xf32, #tpu.memory_space<vmem>>, vector<32x64xf32>
    %cst_9 = arith.constant dense<0.000000e+00> : vector<8x64xf32>
    %10 = tpu.matmul %1, %9, %cst_9 {dimension_numbers = #tpu.dot_dimension_numbers<[1], [0], [0], [1], [0, 0, 1, 1], [], []>} : vector<8x32xf32>, vector<32x64xf32>, vector<8x64xf32> -> vector<8x64xf32>
    %11 = arith.addf %8, %10 : vector<8x64xf32>
    %12 = arith.mulf %0, %1 : vector<8x32xf32>
    %c64 = arith.constant 64 : index
    %c0_10 = arith.constant 0 : index
    %13 = vector.load %arg4[%c64, %c0_10] : memref<96x64xf32, #tpu.memory_space<vmem>>, vector<32x64xf32>
    %cst_11 = arith.constant dense<0.000000e+00> : vector<8x64xf32>
    %14 = tpu.matmul %12, %13, %cst_11 {dimension_numbers = #tpu.dot_dimension_numbers<[1], [0], [0], [1], [0, 0, 1, 1], [], []>} : vector<8x32xf32>, vector<32x64xf32>, vector<8x64xf32> -> vector<8x64xf32>
    %15 = arith.addf %11, %14 : vector<8x64xf32>
    %c0_12 = arith.constant 0 : index
    %c0_13 = arith.constant 0 : index
    %16 = vector.load %arg5[%c0_12, %c0_13] : memref<1x64xf32, #tpu.memory_space<vmem>>, vector<1x64xf32>
    %17 = vector.broadcast %16 : vector<1x64xf32> to vector<8x64xf32>
    %18 = arith.addf %15, %17 : vector<8x64xf32>
    %cst_14 = arith.constant 0.000000e+00 : f32
    %19 = vector.broadcast %cst_14 : f32 to vector<8x64xf32>
    %20 = arith.maximumf %18, %19 : vector<8x64xf32>
    %c0_15 = arith.constant 0 : index
    %c0_16 = arith.constant 0 : index
    %21 = vector.load %arg6[%c0_15, %c0_16] : memref<1x64xf32, #tpu.memory_space<vmem>>, vector<1x64xf32>
    %22 = vector.broadcast %21 : vector<1x64xf32> to vector<8x64xf32>
    %23 = arith.mulf %20, %22 : vector<8x64xf32>
    %cst_17 = arith.constant dense<0.000000e+00> : vector<8xf32>
    %24 = vector.multi_reduction <add>, %23, %cst_17 [1] : vector<8x64xf32> to vector<8xf32>
    %25 = vector.shape_cast %24 : vector<8xf32> to vector<8x1xf32>
    %c0_18 = arith.constant 0 : index
    %26 = memref.load %arg7[%c0_18] : memref<1xf32, #tpu.memory_space<smem>>
    %27 = vector.broadcast %26 : f32 to vector<8x1xf32>
    %28 = arith.addf %25, %27 : vector<8x1xf32>
    %c0_19 = arith.constant 0 : index
    %c0_20 = arith.constant 0 : index
    %29 = vector.load %arg8[%c0_19, %c0_20] : memref<8x2xf32, #tpu.memory_space<vmem>>, vector<8x1xf32>
    tpu.vector_store %arg8[%c0_19, %c0_20], %6 {strides = array<i32>} : memref<8x2xf32, #tpu.memory_space<vmem>>, vector<8x1xf32>,
    %c0_21 = arith.constant 0 : index
    %c1 = arith.constant 1 : index
    %30 = vector.load %arg8[%c0_21, %c1] : memref<8x2xf32, #tpu.memory_space<vmem>>, vector<8x1xf32>
    tpu.vector_store %arg8[%c0_21, %c1], %28 {strides = array<i32>} : memref<8x2xf32, #tpu.memory_space<vmem>>, vector<8x1xf32>,
    return
  }
  func.func @transform_0(%arg0: i32) -> (i32, i32) {
    %c0_i32 = arith.constant 0 : i32
    %c0_i32_0 = arith.constant 0 : i32
    return %arg0, %c0_i32 : i32, i32
  }
  func.func @transform_1(%arg0: i32) -> (i32, i32) {
    %c0_i32 = arith.constant 0 : i32
    %c0_i32_0 = arith.constant 0 : i32
    return %arg0, %c0_i32 : i32, i32
  }
  func.func @transform_2(%arg0: i32) -> (i32, i32) {
    %c0_i32 = arith.constant 0 : i32
    %c0_i32_0 = arith.constant 0 : i32
    %c0_i32_1 = arith.constant 0 : i32
    return %c0_i32, %c0_i32_0 : i32, i32
  }
  func.func @transform_3(%arg0: i32) -> (i32, i32) {
    %c0_i32 = arith.constant 0 : i32
    %c0_i32_0 = arith.constant 0 : i32
    %c0_i32_1 = arith.constant 0 : i32
    return %c0_i32, %c0_i32_0 : i32, i32
  }
  func.func @transform_4(%arg0: i32) -> (i32, i32) {
    %c0_i32 = arith.constant 0 : i32
    %c0_i32_0 = arith.constant 0 : i32
    %c0_i32_1 = arith.constant 0 : i32
    return %c0_i32, %c0_i32_0 : i32, i32
  }
  func.func @transform_5(%arg0: i32) -> (i32, i32) {
    %c0_i32 = arith.constant 0 : i32
    %c0_i32_0 = arith.constant 0 : i32
    %c0_i32_1 = arith.constant 0 : i32
    return %c0_i32, %c0_i32_0 : i32, i32
  }
  func.func @transform_6(%arg0: i32) -> i32 {
    %c0_i32 = arith.constant 0 : i32
    %c0_i32_0 = arith.constant 0 : i32
    return %c0_i32 : i32
  }
  func.func @transform_7(%arg0: i32) -> (i32, i32) {
    %c0_i32 = arith.constant 0 : i32
    %c0_i32_0 = arith.constant 0 : i32
    return %arg0, %c0_i32 : i32, i32
  }
}

</mosaic_0001>

<bundles_post_ra>
// kernel: tpu_custom_call.1
= control target key start
LH: loop header
LB: loop body
LE: loop exit
PB: predicated region body
PF: predicated region fallthrough
CT: control target
= control target key end

     0   :  { %vm34_vm0 = vcmask 261120   ;;  %vm132_vm1 = vcmask 523264   ;;  %vm139_vm2 = vcmask 7168   ;;  %vm141_vm3 = vcmask 15368   ;;  %s257_s3 = inlined_call_operand.vmem [shape: f32[96,64], index: 3, kind: input, shape index: {}]   ;;  %s258_s0 = inlined_call_operand.vmem [shape: f32[8,32], index: 0, kind: input, shape index: {}]   ;;  %s259_s1 = inlined_call_operand.vmem [shape: f32[8,32], index: 1, kind: input, shape index: {}]   ;;  %s260_s4 = inlined_call_operand.vmem [shape: f32[1,64], index: 4, kind: input, shape index: {}]   ;;  %s261_s5 = inlined_call_operand.vmem [shape: f32[1,64], index: 5, kind: input, shape index: {}]   ;;  %s262_s2 = inlined_call_operand.vmem [shape: f32[1,32], index: 2, kind: input, shape index: {}]   ;;  %s263_s6 = inlined_call_operand.<no memory space> [shape: f32[1], index: 6, kind: input, shape index: {}]   ;;  %s264_s7 = inlined_call_operand.vmem [shape: f32[8,2], index: 7, kind: output, shape index: {}]  }
   0x1   :  { %v96_v0 = vld [vmem:[%s257_s3 + $0x58] sm:$0xff]  ;;  %v95_v1 = vld [vmem:[%s257_s3 + $0x50] sm:$0xff]  ;;  %v94_v5 = vld [vmem:[%s257_s3 + $0x48] sm:$0xff]  ;;  %v137_v30 = vstv %s263_s6 }
   0x2   :  { %v45_v2 = vld [vmem:[%s257_s3 + $0x38] sm:$0xff]  ;;  %112 = vmatpush.msra.mxu2 %v96_v0  ;;  %v44_v4 = vld [vmem:[%s257_s3 + $0x30] sm:$0xff]  ;;  %v27_v7 = vld [vmem:[%s258_s0] sm:$0xff] }
   0x3   :  { %61 = vmatpush.msra.mxu0 %v45_v2  ;;  %v41_v3 = vld [vmem:[%s257_s3 + $0x18] sm:$0xff]  ;;  %v40_v6 = vld [vmem:[%s257_s3 + $0x10] sm:$0xff]  ;;  %v28_v8 = vld [vmem:[%s259_s1] sm:$0xff] }
   0x4   :  { %84 = vmatpush.msra.mxu1 %v41_v3  ;;  %113 = vmatpush.msra.mxu2 %v95_v1  ;;  %v43_v9 = vld [vmem:[%s257_s3 + $0x28] sm:$0xff]  ;;  %v93_v11 = vld [vmem:[%s257_s3 + $0x40] sm:$0xff]  ;;  %v92_v12 = vmul.f32 %v28_v8, %v27_v7 }
   0x5   :  { %62 = vmatpush.msra.mxu0 %v44_v4  ;;  %v39_v10 = vld [vmem:[%s257_s3 + $0x8] sm:$0xff]  ;;  %v42_v13 = vld [vmem:[%s257_s3 + $0x20] sm:$0xff] }
   0x6   :  { %85 = vmatpush.msra.mxu1 %v40_v6  ;;  %114 = vmatpush.msra.mxu2 %v94_v5  ;;  %v38_v14 = vld [vmem:[%s257_s3] sm:$0xff] }
   0x7   :  { %63 = vmatpush.msra.mxu0 %v43_v9  ;;  %v150_v18 = vld [vmem:[%s260_s4] ss:$0 sm:$0xff] }
   0x8   :  { %86 = vmatpush.msra.mxu1 %v39_v10  ;;  %115 = vmatpush.msra.mxu2 %v93_v11  ;;  %v151_v22 = vld [vmem:[%s261_s5] ss:$0 sm:$0xff] }
   0x9   :  { %64 = vmatpush.msra.mxu0 %v42_v13  ;;  %149 = vmatmul.msk.f32.vlgmr.msra.gmra.mxu2 %vm34_vm0, %v92_v12  ;;  %v152_v25 = vld [vmem:[%s262_s2] ss:$0 sm:$0xff] }
   0xa   :  { %87 = vmatpush.msra.mxu1 %v38_v14  ;;  %147 = vmatmul.msk.f32.vlgmr.msra.gmra.mxu0 %vm34_vm0, %v28_v8  ;;  %v33_v27 = vmul.f32 %v152_v25, %v28_v8 }
   0xb   :  { %148 = vmatmul.msk.f32.vlgmr.msra.gmra.mxu1 %vm34_vm0, %v27_v7 }
   0xc   :  { %v35_v28 = vsel %vm34_vm0, %v33_v27, 0.0 }
  0x87   :  { %v66_v15 = vpop.f32.mrf.mxu0 }
  0x88   :  { %v89_v16 = vpop.f32.mrf.mxu1 }
  0x89   :  { %v90_v17 = vadd.f32 %v89_v16, %v66_v15 }
  0x8c   :  { %v117_v19 = vpop.f32.mrf.mxu2 }
  0x8d   :  { %v120_v20 = vadd.f32 %v117_v19, %v90_v17 }
  0x8f   :  { %v125_v21 = vadd.f32 %v150_v18, %v120_v20 }
  0x91   :  { %v126_v23 = vmax.f32 %v125_v21, 0.0 }
  0x93   :  { %v131_v24 = vmul.f32 %v151_v22, %v126_v23 }
  0x95   :  { %v133_v26 = vsel %vm132_vm1, %v131_v24, 0.0 }
  0x96   :  { %134 = vadd.xlane.f32.xlu0 %v133_v26 }
  0x9e   :  { %36 = vadd.xlane.f32.xlu0 %v35_v28 }
 0x109   :  { %v135_v29 = vpop.xlane.xlu0 %134 }
 0x10a   :  { %v138_v31 = vadd.f32 %v137_v30, %v135_v29 }
 0x111   :  { %v37_v32 = vpop.xlane.xlu0 %36 }
 0x112   :  { %140 = vst.msk [vmem:[%s264_s7] sm:$0xff] %vm139_vm2, %v37_v32 }
 0x113   :  { %142 = vst.msk [vmem:[%s264_s7] sm:$0xff] %vm141_vm3, %v138_v31 }

</bundles_post_ra>
